<compile_context>
chip_gen: v6e
topology: v6e:2x2x1
jax: 0.10.0
libtpu: 0.0.40
codegen_flags: <defaults>
</compile_context>

<pallas_src>
import functools

import jax
import jax.numpy as jnp
from jax import lax
from jax.experimental import pallas as pl
from jax.experimental.pallas import tpu as pltpu


_LOGV_CLAMP = 15.0  # clamp log-variance before exp (avoids inf var for an untrained head)


# ----------------------------- helpers ------------------------------------- #

def _apply_activation(x, activation: str):
    if activation == "relu":
        return jnp.maximum(x, 0.0)
    elif activation == "gelu":
        # nn.GELU() default is the exact erf formulation.
        return jax.nn.gelu(x, approximate=False)
    elif activation == "silu":
        return x * jax.nn.sigmoid(x)
    else:
        raise ValueError(f"Unsupported activation: {activation}")


def _round_up(x: int, m: int) -> int:
    return ((x + m - 1) // m) * m


def _tiling(batch: int, target_tb: int):
    """Row tiling: returns (tile_rows, padded_batch); tile_rows divides padded_batch."""
    assert target_tb % 8 == 0, "target_tb must be a multiple of 8 (prefer 128)"
    if batch <= target_tb:
        tb = _round_up(batch, 8)
        return tb, tb
    return target_tb, _round_up(batch, target_tb)


def _pad_rows(a, padded_rows: int, value=0.0):
    if a.shape[0] == padded_rows:
        return a
    return jnp.pad(a, ((0, padded_rows - a.shape[0]), (0, 0)), constant_values=value)


def _row_spec(tb, cols):
    return pl.BlockSpec((tb, cols), lambda i: (i, 0))


def _resident_spec(rows, cols):
    # Same block for every grid step -> weights stay resident in VMEM.
    return pl.BlockSpec((rows, cols), lambda i: (0, 0))


def _partial_spec(cols):
    # Per-tile loss partials: (grid, 1, cols) array, block (1, 1, cols) -> lane-dense,
    # disjoint per grid step (enables "parallel" semantics for the loss path).
    return pl.BlockSpec((1, 1, cols), lambda i: (i, 0, 0))


def _vmem_limit_bytes(*byte_counts):
    # 2x (double-buffered tiles + resident weights) + headroom, capped v7x-safe.
    need = 2 * int(sum(int(b) for b in byte_counts)) + (4 << 20)
    return int(min(max(need, 16 << 20), 64 << 20))


def _act_transcendentals(activation: str, count: int) -> int:
    return 0 if activation == "relu" else count


def _masked(per_elem, tile_rows: int, valid_rows: int):
    row = pl.program_id(0) * tile_rows + lax.broadcasted_iota(jnp.int32, per_elem.shape, 0)
    return jnp.where(row < valid_rows, per_elem, 0.0)


# ----------------------------- kernels ------------------------------------- #

def _encode_kernel(x_ref, we_ref, be_ref, e_ref, *, activation):
    """e = activation(x @ We + be). bf16 MXU operands, f32 accumulate; bf16 store."""
    x = x_ref[...].astype(jnp.bfloat16)
    h = jnp.dot(x, we_ref[...], preferred_element_type=jnp.float32) + be_ref[...]
    e_ref[...] = _apply_activation(h, activation).astype(e_ref.dtype)


def _predict_kernel(e_ref, wh_ref, bh_ref, mean_ref, var_ref, *, embed_dim):
    """[mean | logv] = e @ Wh + bh (one MXU pass); var = exp(clamp(logv))."""
    e = e_ref[...].astype(jnp.bfloat16)   # no-op when the embedding is stored bf16
    z = jnp.dot(e, wh_ref[...], preferred_element_type=jnp.float32) + bh_ref[...]
    # TODO(synk): if embed_dim % 128 != 0, emit the full [tb, 2E] slab and split
    # outside to avoid lane-layout copies; embed_dim=128 keeps this split free.
    mean_ref[...] = z[:, :embed_dim].astype(mean_ref.dtype)
    logv = jnp.clip(z[:, embed_dim:], -_LOGV_CLAMP, _LOGV_CLAMP)
    var_ref[...] = jnp.exp(logv).astype(var_ref.dtype)


def _fused_fwd_kernel(x_ref, we_ref, be_ref, wh_ref, bh_ref, mean_ref, var_ref,
                      *, activation, embed_dim):
    """Fused forward: encode -> activation -> fused (mean|logv) head, all in VMEM."""
    x = x_ref[...].astype(jnp.bfloat16)
    h = jnp.dot(x, we_ref[...], preferred_element_type=jnp.float32) + be_ref[...]
    e = _apply_activation(h, activation)
    z = jnp.dot(e.astype(jnp.bfloat16), wh_ref[...],
                preferred_element_type=jnp.float32) + bh_ref[...]
    mean_ref[...] = z[:, :embed_dim].astype(mean_ref.dtype)
    logv = jnp.clip(z[:, embed_dim:], -_LOGV_CLAMP, _LOGV_CLAMP)
    var_ref[...] = jnp.exp(logv).astype(var_ref.dtype)


def _fused_fwd_loss_kernel(x_ref, t_ref, we_ref, be_ref, wh_ref, bh_ref,
                           mean_ref, var_ref, part_ref,
                           *, activation, embed_dim, tile_rows, valid_rows, mask_rows):
    """Fused forward + per-tile heteroscedastic partial loss.

    var = exp(logv) is computed ONCE and reused; the per-element loss is the
    exact 0.5*logv + 0.5*(t-mean)^2/var.  Each grid step writes its own
    lane-dense partial sum -> the grid axis stays "parallel" (v7x dual-TC)."""
    x = x_ref[...].astype(jnp.bfloat16)
    h = jnp.dot(x, we_ref[...], preferred_element_type=jnp.float32) + be_ref[...]
    e = _apply_activation(h, activation)
    z = jnp.dot(e.astype(jnp.bfloat16), wh_ref[...],
                preferred_element_type=jnp.float32) + bh_ref[...]
    mean = z[:, :embed_dim]
    logv = jnp.clip(z[:, embed_dim:], -_LOGV_CLAMP, _LOGV_CLAMP)
    var = jnp.exp(logv)                       # single EUP pass, reused below
    mean_ref[...] = mean.astype(mean_ref.dtype)
    var_ref[...] = var.astype(var_ref.dtype)

    diff = t_ref[...].astype(jnp.float32) - mean
    per_elem = 0.5 * logv + 0.5 * diff * diff / var
    if mask_rows:
        per_elem = _masked(per_elem, tile_rows, valid_rows)
    part_ref[0] = jnp.sum(per_elem, axis=0, keepdims=True)   # (1, E) tile partial


def _het_loss_kernel(mean_ref, var_ref, tgt_ref, part_ref,
                     *, tile_rows, valid_rows, mask_rows):
    """Per-tile partial of torch.mean(0.5*log(var) + 0.5*(target-mean)^2 / var)."""
    mean = mean_ref[...].astype(jnp.float32)
    var = var_ref[...].astype(jnp.float32)
    tgt = tgt_ref[...].astype(jnp.float32)
    diff = tgt - mean
    per_elem = 0.5 * jnp.log(var) + 0.5 * diff * diff / var   # exact reciprocal
    if mask_rows:
        per_elem = _masked(per_elem, tile_rows, valid_rows)
    part_ref[0] = jnp.sum(per_elem, axis=0, keepdims=True)


# ----------------------------- wrappers ------------------------------------- #

def encode(x, w_enc, b_enc, *, activation="relu", target_tb=512):
    batch, input_dim = x.shape
    embed_dim = w_enc.shape[1]
    tb, padded = _tiling(batch, target_tb)
    xp = _pad_rows(x, padded)
    cost = pl.CostEstimate(
        flops=2 * padded * input_dim * embed_dim,
        transcendentals=_act_transcendentals(activation, padded * embed_dim),
        bytes_accessed=xp.size * 4 + w_enc.size * 2 + b_enc.size * 4
        + padded * embed_dim * 2,
    )
    vmem = _vmem_limit_bytes(tb * input_dim * 4, tb * embed_dim * 2,
                             w_enc.size * 2, b_enc.size * 4)
    emb = pl.pallas_call(
        functools.partial(_encode_kernel, activation=activation),
        grid=(padded // tb,),
        in_specs=[_row_spec(tb, input_dim),
                  _resident_spec(input_dim, embed_dim),
                  _resident_spec(1, embed_dim)],
        out_specs=_row_spec(tb, embed_dim),
        # bf16 embedding: halves the HBM round trip and feeds the head MXU directly.
        out_shape=jax.ShapeDtypeStruct((padded, embed_dim), jnp.bfloat16),
        compiler_params=pltpu.CompilerParams(
            dimension_semantics=("parallel",), vmem_limit_bytes=vmem),
        cost_estimate=cost,
    )(xp, w_enc, b_enc)
    return emb[:batch] if padded != batch else emb


def predict(embedding, w_head, b_head, *, target_tb=512):
    batch, embed_dim = embedding.shape
    tb, padded = _tiling(batch, target_tb)
    ep = _pad_rows(embedding, padded)
    cost = pl.CostEstimate(
        flops=4 * padded * embed_dim * embed_dim,
        transcendentals=padded * embed_dim,
        bytes_accessed=ep.size * ep.dtype.itemsize + w_head.size * 2
        + b_head.size * 4 + 2 * padded * embed_dim * 4,
    )
    vmem = _vmem_limit_bytes(tb * embed_dim * ep.dtype.itemsize,
                             2 * tb * embed_dim * 4,
                             w_head.size * 2, b_head.size * 4)
    mean, var = pl.pallas_call(
        functools.partial(_predict_kernel, embed_dim=embed_dim),
        grid=(padded // tb,),
        in_specs=[_row_spec(tb, embed_dim),
                  _resident_spec(embed_dim, 2 * embed_dim),
                  _resident_spec(1, 2 * embed_dim)],
        out_specs=(_row_spec(tb, embed_dim), _row_spec(tb, embed_dim)),
        out_shape=(jax.ShapeDtypeStruct((padded, embed_dim), jnp.float32),
                   jax.ShapeDtypeStruct((padded, embed_dim), jnp.float32)),
        compiler_params=pltpu.CompilerParams(
            dimension_semantics=("parallel",), vmem_limit_bytes=vmem),
        cost_estimate=cost,
    )(ep, w_head, b_head)
    if padded != batch:
        mean, var = mean[:batch], var[:batch]
    return {"mean": mean, "var": var}


def fused_forward(x, w_enc, b_enc, w_head, b_head, *, activation="relu", target_tb=512):
    batch, input_dim = x.shape
    embed_dim = w_enc.shape[1]
    tb, padded = _tiling(batch, target_tb)
    xp = _pad_rows(x, padded)
    cost = pl.CostEstimate(
        flops=2 * padded * input_dim * embed_dim + 4 * padded * embed_dim * embed_dim,
        transcendentals=padded * embed_dim
        + _act_transcendentals(activation, padded * embed_dim),
        bytes_accessed=xp.size * 4 + w_enc.size * 2 + w_head.size * 2
        + (b_enc.size + b_head.size) * 4 + 2 * padded * embed_dim * 4,
    )
    vmem = _vmem_limit_bytes(tb * input_dim * 4, 2 * tb * embed_dim * 4,
                             w_enc.size * 2, w_head.size * 2,
                             (b_enc.size + b_head.size) * 4)
    mean, var = pl.pallas_call(
        functools.partial(_fused_fwd_kernel, activation=activation, embed_dim=embed_dim),
        grid=(padded // tb,),
        in_specs=[_row_spec(tb, input_dim),
                  _resident_spec(input_dim, embed_dim),
                  _resident_spec(1, embed_dim),
                  _resident_spec(embed_dim, 2 * embed_dim),
                  _resident_spec(1, 2 * embed_dim)],
        out_specs=(_row_spec(tb, embed_dim), _row_spec(tb, embed_dim)),
        out_shape=(jax.ShapeDtypeStruct((padded, embed_dim), jnp.float32),
                   jax.ShapeDtypeStruct((padded, embed_dim), jnp.float32)),
        compiler_params=pltpu.CompilerParams(
            dimension_semantics=("parallel",), vmem_limit_bytes=vmem),
        cost_estimate=cost,
    )(xp, w_enc, b_enc, w_head, b_head)
    if padded != batch:
        mean, var = mean[:batch], var[:batch]
    return mean, var


def fused_forward_with_loss(x, target, w_enc, b_enc, w_head, b_head,
                            *, activation="relu", target_tb=512):
    batch, input_dim = x.shape
    embed_dim = w_enc.shape[1]
    tb, padded = _tiling(batch, target_tb)
    grid = padded // tb
    xp = _pad_rows(x, padded)
    tp = _pad_rows(target, padded)
    mask_rows = padded != batch
    cost = pl.CostEstimate(
        flops=2 * padded * input_dim * embed_dim + 4 * padded * embed_dim * embed_dim
        + 8 * padded * embed_dim,
        transcendentals=padded * embed_dim
        + _act_transcendentals(activation, padded * embed_dim),
        bytes_accessed=(xp.size + tp.size) * 4 + w_enc.size * 2 + w_head.size * 2
        + (b_enc.size + b_head.size) * 4 + 2 * padded * embed_dim * 4
        + grid * embed_dim * 4,
    )
    vmem = _vmem_limit_bytes(2 * tb * input_dim * 4, 3 * tb * embed_dim * 4,
                             w_enc.size * 2, w_head.size * 2,
                             (b_enc.size + b_head.size) * 4)
    mean, var, parts = pl.pallas_call(
        functools.partial(_fused_fwd_loss_kernel, activation=activation,
                          embed_dim=embed_dim, tile_rows=tb,
                          valid_rows=batch, mask_rows=mask_rows),
        grid=(grid,),
        in_specs=[_row_spec(tb, input_dim),
                  _row_spec(tb, embed_dim),
                  _resident_spec(input_dim, embed_dim),
                  _resident_spec(1, embed_dim),
                  _resident_spec(embed_dim, 2 * embed_dim),
                  _resident_spec(1, 2 * embed_dim)],
        out_specs=(_row_spec(tb, embed_dim), _row_spec(tb, embed_dim),
                   _partial_spec(embed_dim)),
        out_shape=(jax.ShapeDtypeStruct((padded, embed_dim), jnp.float32),
                   jax.ShapeDtypeStruct((padded, embed_dim), jnp.float32),
                   jax.ShapeDtypeStruct((grid, 1, embed_dim), jnp.float32)),
        # Disjoint per-tile partials -> no cross-step accumulator -> "parallel"
        # (keeps both v7x TensorCores busy on the training path).
        compiler_params=pltpu.CompilerParams(
            dimension_semantics=("parallel",), vmem_limit_bytes=vmem),
        cost_estimate=cost,
    )(xp, tp, w_enc, b_enc, w_head, b_head)
    loss = jnp.sum(parts) * (1.0 / float(batch * embed_dim))   # tiny final reduce in XLA
    if mask_rows:
        mean, var = mean[:batch], var[:batch]
    return mean, var, loss


def heteroscedastic_loss(mean, var, target, *, target_tb=512):
    batch, n = mean.shape
    tb, padded = _tiling(batch, target_tb)
    grid = padded // tb
    mask_rows = padded != batch
    mp = _pad_rows(mean, padded)
    vp = _pad_rows(var, padded, value=1.0)   # keep log/div well-defined on pad rows
    tp = _pad_rows(target, padded)
    vmem = _vmem_limit_bytes(3 * tb * n * 4)
    parts = pl.pallas_call(
        functools.partial(_het_loss_kernel, tile_rows=tb,
                          valid_rows=batch, mask_rows=mask_rows),
        grid=(grid,),
        in_specs=[_row_spec(tb, n)] * 3,
        out_specs=_partial_spec(n),
        out_shape=jax.ShapeDtypeStruct((grid, 1, n), jnp.float32),
        compiler_params=pltpu.CompilerParams(
            dimension_semantics=("parallel",), vmem_limit_bytes=vmem),
    )(mp, vp, tp)
    return jnp.sum(parts) * (1.0 / float(batch * n))


# ----------------------------- adapter class -------------------------------- #

class BaseAdapterPallas:
    """Concrete minimal BaseAdapter with Pallas-backed (fused) forward/loss.

    encode/predict are abstract in the PyTorch base class; this instantiation
    uses a linear encoder + activation and a heteroscedastic (mean, var) head.
    forward() runs the fully fused single-kernel path (same math as
    predict(encode(inputs))); the separate encode/predict kernels remain for
    API compatibility.
    """

    def __init__(self, input_dim, embed_dim, uncertainty_type="heteroscedastic",
                 dropout_rate=0.1, activation="relu", key=None, target_tb=512):
        if activation not in ("relu", "gelu", "silu"):
            raise ValueError(f"Unsupported activation: {activation}")
        if key is None:
            key = jax.random.PRNGKey(0)
        self.embed_dim = embed_dim
        self.uncertainty_type = uncertainty_type
        self.dropout_rate = dropout_rate  # TODO(synk): dropout is a no-op in eval/forward.
        self.activation = activation
        self.target_tb = target_tb

        k1, k2 = jax.random.split(key, 2)
        s_in = 1.0 / jnp.sqrt(jnp.float32(input_dim))
        s_emb = 1.0 / jnp.sqrt(jnp.float32(embed_dim))
        # Weights stored bf16 (halves HBM/VMEM traffic; MXU-friendly); biases f32.
        self.w_enc = (jax.random.normal(k1, (input_dim, embed_dim), jnp.float32)
                      * s_in).astype(jnp.bfloat16)
        self.b_enc = jnp.zeros((1, embed_dim), jnp.float32)
        # Fused [mean | logvar] head: one [E, 2E] weight -> single MXU pass.
        self.w_head = (jax.random.normal(k2, (embed_dim, 2 * embed_dim), jnp.float32)
                       * s_emb).astype(jnp.bfloat16)
        self.b_head = jnp.zeros((1, 2 * embed_dim), jnp.float32)

    # --- BaseAdapter interface ---
    def encode(self, inputs):
        return encode(inputs["x"], self.w_enc, self.b_enc,
                      activation=self.activation, target_tb=self.target_tb)

    def predict(self, embedding):
        return predict(embedding, self.w_head, self.b_head, target_tb=self.target_tb)

    def forward(self, inputs):
        mean, var = fused_forward(inputs["x"], self.w_enc, self.b_enc,
                                  self.w_head, self.b_head,
                                  activation=self.activation, target_tb=self.target_tb)
        return {"mean": mean, "var": var}

    __call__ = forward

    def forward_with_loss(self, inputs, target):
        mean, var, loss = fused_forward_with_loss(
            inputs["x"], target, self.w_enc, self.b_enc,
            self.w_head, self.b_head, activation=self.activation,
            target_tb=self.target_tb)
        return {"mean": mean, "var": var}, loss

    def kl_divergence(self):
        return jnp.asarray(0.0, jnp.float32)

    @staticmethod
    def heteroscedastic_loss(mean, var, target):
        return heteroscedastic_loss(mean, var, target)

    def get_uncertainty_type(self):
        return self.uncertainty_type

    # TODO(synk): predict_with_uncertainty (MC-dropout sampling loop) is a host-side
    # sampling procedure, not a single kernel; left unimplemented here.


# ------------------------------- main --------------------------------------- #

if __name__ == "__main__":
    key = jax.random.PRNGKey(0)
    k_x, k_t, k_p = jax.random.split(key, 3)

    # Lane-dense, 128-aligned small shapes.
    batch, input_dim, embed_dim = 256, 128, 128
    x = jax.random.normal(k_x, (batch, input_dim), jnp.float32)
    target = jax.random.normal(k_t, (batch, embed_dim), jnp.float32)

    adapter = BaseAdapterPallas(input_dim, embed_dim, activation="relu", key=k_p)

    # Fused forward (single pallas_call: encode -> predict).
    outputs = adapter({"x": x})
    # Fully fused forward + heteroscedastic loss (embedding never leaves VMEM).
    outputs2, loss_fused = adapter.forward_with_loss({"x": x}, target)
    # API-compat unfused path (bf16 embedding) + standalone static loss kernel.
    emb = adapter.encode({"x": x})
    outputs3 = adapter.predict(emb)
    loss_static = BaseAdapterPallas.heteroscedastic_loss(
        outputs["mean"], outputs["var"], target)
    kl = adapter.kl_divergence()

    jax.block_until_ready((outputs["mean"], outputs["var"], outputs2["mean"],
                           outputs2["var"], outputs3["mean"], outputs3["var"],
                           emb, loss_fused, loss_static, kl))

    # --- plain-JAX reference (same bf16-operand / f32-accumulate math) ---
    def reference(xin, tin):
        xb = xin.astype(jnp.bfloat16)
        e = jnp.maximum(
            jnp.dot(xb, adapter.w_enc, preferred_element_type=jnp.float32) + adapter.b_enc,
            0.0)
        z = jnp.dot(e.astype(jnp.bfloat16), adapter.w_head,
                    preferred_element_type=jnp.float32) + adapter.b_head
        m = z[:, :embed_dim]
        lv = jnp.clip(z[:, embed_dim:], -_LOGV_CLAMP, _LOGV_CLAMP)
        v = jnp.exp(lv)
        l = jnp.mean(0.5 * jnp.log(v) + 0.5 * (tin - m) ** 2 / v)
        return e, m, v, l

    emb_ref, mean_ref, var_ref, loss_ref = reference(x, target)

    assert jnp.allclose(emb.astype(jnp.float32), emb_ref, atol=3e-2, rtol=3e-2)
    assert jnp.allclose(outputs["mean"], mean_ref, atol=2e-2, rtol=2e-2)
    assert jnp.allclose(outputs["var"], var_ref, atol=2e-2, rtol=2e-2)
    assert jnp.allclose(outputs2["mean"], mean_ref, atol=2e-2, rtol=2e-2)
    assert jnp.allclose(outputs2["var"], var_ref, atol=2e-2, rtol=2e-2)
    assert jnp.allclose(outputs3["mean"], mean_ref, atol=2e-2, rtol=2e-2)
    assert jnp.allclose(outputs3["var"], var_ref, atol=2e-2, rtol=2e-2)
    assert jnp.allclose(loss_fused, loss_ref, atol=2e-2, rtol=2e-2)
    assert jnp.allclose(loss_static, loss_ref, atol=2e-2, rtol=2e-2)
    assert jnp.allclose(kl, 0.0)

    # --- ragged batch: exercises the cdiv/pad + masked-loss path (multi-tile, parallel) ---
    batch2 = 200
    x2 = jax.random.normal(k_x, (batch2, input_dim), jnp.float32)
    t2 = jax.random.normal(k_t, (batch2, embed_dim), jnp.float32)
    m2, v2, l2 = fused_forward_with_loss(
        x2, t2, adapter.w_enc, adapter.b_enc, adapter.w_head, adapter.b_head,
        activation="relu", target_tb=64)
    ls2 = heteroscedastic_loss(m2, v2, t2, target_tb=64)
    jax.block_until_ready((m2, v2, l2, ls2))

    _, m2_ref, v2_ref, l2_ref = reference(x2, t2)
    assert m2.shape == (batch2, embed_dim) and v2.shape == (batch2, embed_dim)
    assert jnp.allclose(m2, m2_ref, atol=2e-2, rtol=2e-2)
    assert jnp.allclose(v2, v2_ref, atol=2e-2, rtol=2e-2)
    assert jnp.allclose(l2, l2_ref, atol=2e-2, rtol=2e-2)
    assert jnp.allclose(ls2, l2_ref, atol=2e-2, rtol=2e-2)

    print("KERNEL_OK")
</pallas_src>

<mosaic_0001>
module attributes {stable_mosaic.version = 11 : i64} {
  func.func @_fused_fwd_kernel(%arg0: i32, %arg1: memref<256x128xf32, #tpu.memory_space<vmem>>, %arg2: memref<128x128xbf16, #tpu.memory_space<vmem>>, %arg3: memref<1x128xf32, #tpu.memory_space<vmem>>, %arg4: memref<128x256xbf16, #tpu.memory_space<vmem>>, %arg5: memref<1x256xf32, #tpu.memory_space<vmem>>, %arg6: memref<256x128xf32, #tpu.memory_space<vmem>>, %arg7: memref<256x128xf32, #tpu.memory_space<vmem>>) attributes {dimension_semantics = [#tpu.dimension_semantics<parallel>], iteration_bounds = array<i64: 1>, scalar_prefetch = 0 : i64, scratch_operands = 0 : i64, tpu.core_type = #tpu.core_type<tc>, window_params = [{transform_indices = @transform_0, window_bounds = array<i64: 256, 128>}, {pipeline_mode = #tpu.pipeline_mode<synchronous>, transform_indices = @transform_1, window_bounds = array<i64: 128, 128>}, {pipeline_mode = #tpu.pipeline_mode<synchronous>, transform_indices = @transform_2, window_bounds = array<i64: 1, 128>}, {pipeline_mode = #tpu.pipeline_mode<synchronous>, transform_indices = @transform_3, window_bounds = array<i64: 128, 256>}, {pipeline_mode = #tpu.pipeline_mode<synchronous>, transform_indices = @transform_4, window_bounds = array<i64: 1, 256>}, {transform_indices = @transform_5, window_bounds = array<i64: 256, 128>}, {transform_indices = @transform_6, window_bounds = array<i64: 256, 128>}]} {
    %c0 = arith.constant 0 : index
    %c0_0 = arith.constant 0 : index
    %0 = vector.load %arg1[%c0, %c0_0] : memref<256x128xf32, #tpu.memory_space<vmem>>, vector<256x128xf32>
    %1 = arith.truncf %0 : vector<256x128xf32> to vector<256x128xbf16>
    %c0_1 = arith.constant 0 : index
    %c0_2 = arith.constant 0 : index
    %2 = vector.load %arg2[%c0_1, %c0_2] : memref<128x128xbf16, #tpu.memory_space<vmem>>, vector<128x128xbf16>
    %cst = arith.constant dense<0.000000e+00> : vector<256x128xf32>
    %3 = tpu.matmul %1, %2, %cst {dimension_numbers = #tpu.dot_dimension_numbers<[1], [0], [0], [1], [0, 0, 1, 1], [], []>} : vector<256x128xbf16>, vector<128x128xbf16>, vector<256x128xf32> -> vector<256x128xf32>
    %c0_3 = arith.constant 0 : index
    %c0_4 = arith.constant 0 : index
    %4 = vector.load %arg3[%c0_3, %c0_4] : memref<1x128xf32, #tpu.memory_space<vmem>>, vector<1x128xf32>
    %5 = vector.broadcast %4 : vector<1x128xf32> to vector<256x128xf32>
    %6 = arith.addf %3, %5 : vector<256x128xf32>
    %cst_5 = arith.constant 0.000000e+00 : f32
    %7 = vector.broadcast %cst_5 : f32 to vector<256x128xf32>
    %8 = arith.maximumf %6, %7 : vector<256x128xf32>
    %9 = arith.truncf %8 : vector<256x128xf32> to vector<256x128xbf16>
    %c0_6 = arith.constant 0 : index
    %c0_7 = arith.constant 0 : index
    %10 = vector.load %arg4[%c0_6, %c0_7] : memref<128x256xbf16, #tpu.memory_space<vmem>>, vector<128x256xbf16>
    %cst_8 = arith.constant dense<0.000000e+00> : vector<256x256xf32>
    %11 = tpu.matmul %9, %10, %cst_8 {dimension_numbers = #tpu.dot_dimension_numbers<[1], [0], [0], [1], [0, 0, 1, 1], [], []>} : vector<256x128xbf16>, vector<128x256xbf16>, vector<256x256xf32> -> vector<256x256xf32>
    %c0_9 = arith.constant 0 : index
    %c0_10 = arith.constant 0 : index
    %12 = vector.load %arg5[%c0_9, %c0_10] : memref<1x256xf32, #tpu.memory_space<vmem>>, vector<1x256xf32>
    %13 = vector.broadcast %12 : vector<1x256xf32> to vector<256x256xf32>
    %14 = arith.addf %11, %13 : vector<256x256xf32>
    %15 = vector.extract_strided_slice %14 {offsets = [0, 0], sizes = [256, 128], strides = [1, 1]} : vector<256x256xf32> to vector<256x128xf32>
    %c0_11 = arith.constant 0 : index
    %c0_12 = arith.constant 0 : index
    %16 = vector.load %arg6[%c0_11, %c0_12] : memref<256x128xf32, #tpu.memory_space<vmem>>, vector<256x128xf32>
    tpu.vector_store %arg6[%c0_11, %c0_12], %15 {strides = array<i32>} : memref<256x128xf32, #tpu.memory_space<vmem>>, vector<256x128xf32>,
    %17 = vector.extract_strided_slice %14 {offsets = [0, 128], sizes = [256, 128], strides = [1, 1]} : vector<256x256xf32> to vector<256x128xf32>
    %cst_13 = arith.constant -1.500000e+01 : f32
    %cst_14 = arith.constant 1.500000e+01 : f32
    %18 = vector.broadcast %cst_13 : f32 to vector<256x128xf32>
    %19 = arith.maximumf %18, %17 : vector<256x128xf32>
    %20 = vector.broadcast %cst_14 : f32 to vector<256x128xf32>
    %21 = arith.minimumf %20, %19 : vector<256x128xf32>
    %22 = math.exp %21 : vector<256x128xf32>
    %c0_15 = arith.constant 0 : index
    %c0_16 = arith.constant 0 : index
    %23 = vector.load %arg7[%c0_15, %c0_16] : memref<256x128xf32, #tpu.memory_space<vmem>>, vector<256x128xf32>
    tpu.vector_store %arg7[%c0_15, %c0_16], %22 {strides = array<i32>} : memref<256x128xf32, #tpu.memory_space<vmem>>, vector<256x128xf32>,
    return
  }
  func.func @transform_0(%arg0: i32) -> (i32, i32) {
    %c0_i32 = arith.constant 0 : i32
    %c0_i32_0 = arith.constant 0 : i32
    return %arg0, %c0_i32 : i32, i32
  }
  func.func @transform_1(%arg0: i32) -> (i32, i32) {
    %c0_i32 = arith.constant 0 : i32
    %c0_i32_0 = arith.constant 0 : i32
    %c0_i32_1 = arith.constant 0 : i32
    return %c0_i32, %c0_i32_0 : i32, i32
  }
  func.func @transform_2(%arg0: i32) -> (i32, i32) {
    %c0_i32 = arith.constant 0 : i32
    %c0_i32_0 = arith.constant 0 : i32
    %c0_i32_1 = arith.constant 0 : i32
    return %c0_i32, %c0_i32_0 : i32, i32
  }
  func.func @transform_3(%arg0: i32) -> (i32, i32) {
    %c0_i32 = arith.constant 0 : i32
    %c0_i32_0 = arith.constant 0 : i32
    %c0_i32_1 = arith.constant 0 : i32
    return %c0_i32, %c0_i32_0 : i32, i32
  }
  func.func @transform_4(%arg0: i32) -> (i32, i32) {
    %c0_i32 = arith.constant 0 : i32
    %c0_i32_0 = arith.constant 0 : i32
    %c0_i32_1 = arith.constant 0 : i32
    return %c0_i32, %c0_i32_0 : i32, i32
  }
  func.func @transform_5(%arg0: i32) -> (i32, i32) {
    %c0_i32 = arith.constant 0 : i32
    %c0_i32_0 = arith.constant 0 : i32
    return %arg0, %c0_i32 : i32, i32
  }
  func.func @transform_6(%arg0: i32) -> (i32, i32) {
    %c0_i32 = arith.constant 0 : i32
    %c0_i32_0 = arith.constant 0 : i32
    return %arg0, %c0_i32 : i32, i32
  }
}

</mosaic_0001>

<bundles_post_ra>
// kernel: tpu_custom_call.1
= control target key start
LH: loop header
LB: loop body
LE: loop exit
PB: predicated region body
PF: predicated region fallthrough
CT: control target
= control target key end

     0   :  { %12 = vsyncpa [#allocation3], 0  ;;  %s1476_s0 = inlined_call_operand.hbm [shape: f32[256,128], index: 0, kind: input, shape index: {}]   ;;  %s1477_s1 = inlined_call_operand.hbm [shape: bf16[128,128], index: 1, kind: input, shape index: {}]   ;;  %s1478_s2 = inlined_call_operand.vmem [shape: f32[1,128], index: 2, kind: input, shape index: {}]   ;;  %s1479_s3 = inlined_call_operand.hbm [shape: bf16[128,256], index: 3, kind: input, shape index: {}]   ;;  %s1480_s4 = inlined_call_operand.vmem [shape: f32[1,256], index: 4, kind: input, shape index: {}]   ;;  %s1481_s5 = inlined_call_operand.hbm [shape: f32[256,128], index: 5, kind: output, shape index: {0}]   ;;  %s1482_s6 = inlined_call_operand.hbm [shape: f32[256,128], index: 6, kind: output, shape index: {1}]  }
   0x1   :  { %13 = vsyncpa [#allocation6], 0 }
   0x2   :  { %14 = vsyncpa [#allocation4], 0 }
   0x3   :  { %15 = vsyncpa [#allocation10], 0  ;;  %s1280_s21 = smov [#allocation5]  }
   0x4   :  { %s33_s22 = sshll.u32 %s1280_s21, 4  ;;  %s34_s22 = int_to_ptr.vmem [resolvable:$true] %s33_s22 }
   0x5   :  { %s1180_s23 = scalar_lea.vmem %s34_s22, 1024  ;;  %p1185_p1 = scmp.lt.s32.totalorder %s34_s22, %s34_s22 }
   0x6   :  { %p1181_p0 = scmp.ne.s32.totalorder %s34_s22, %s1180_s23  ;;  %p1186_p2 = scmp.lt.s32.totalorder %s1180_s23, %s1180_s23 }
   0x8   :  { %p1187_p3 = por %p1186_p2, %p1185_p1 }
   0xa   :  { %p1188_p4 = pnand %p1187_p3, %p1181_p0 }
   0xc   :  { %1191 = shalt.err (!%p1188_p4)
}
   0xd   :  { %s1281_s24 = smov 64   ;;  %s1282_s25 = smov 4  }
   0xe   :  { %39 = dma.hbm_to_vmem [thread:$0]  %s1477_s1, 1024, %s34_s22, [#allocation6], %s1281_s24, %s1281_s24, %s1282_s25  }
   0xf   :  { %s1283_s28 = smov [#allocation2]  }
  0x10   :  { %s21_s29 = sshll.u32 %s1283_s28, 4  ;;  %s22_s29 = int_to_ptr.vmem [resolvable:$true] %s21_s29 }
  0x11   :  { %s1200_s30 = scalar_lea.vmem %s22_s29, 4096  ;;  %p1205_p6 = scmp.lt.s32.totalorder %s22_s29, %s22_s29 }
  0x12   :  { %p1201_p5 = scmp.ne.s32.totalorder %s22_s29, %s1200_s30  ;;  %p1206_p7 = scmp.lt.s32.totalorder %s1200_s30, %s1200_s30 }
  0x14   :  { %p1207_p8 = por %p1206_p7, %p1205_p6 }
  0x16   :  { %p1208_p9 = pnand %p1207_p8, %p1201_p5 }
  0x18   :  { %1211 = shalt.err (!%p1208_p9)
}
  0x19   :  { %s1284_s7 = smov 128   ;;  %s1285_s8 = smov 8  }
  0x1a   :  { %27 = dma.hbm_to_vmem [thread:$0]  %s1476_s0, 4096, %s22_s29, [#allocation3], %s1284_s7, %s1284_s7, %s1285_s8  }
  0x1b   :  { %s1286_s1 = smov [#allocation7]  }
  0x1c   :  { %s47_s11 = sshll.u32 %s1286_s1, 4  ;;  %s48_s11 = int_to_ptr.vmem [resolvable:$true] %s47_s11 }
  0x1d   :  { %s1220_s12 = scalar_lea.vmem %s48_s11, 2048  ;;  %p1225_p11 = scmp.lt.s32.totalorder %s48_s11, %s48_s11 }
  0x1e   :  { %p1221_p10 = scmp.ne.s32.totalorder %s48_s11, %s1220_s12  ;;  %p1226_p12 = scmp.lt.s32.totalorder %s1220_s12, %s1220_s12 }
  0x20   :  { %p1227_p13 = por %p1226_p12, %p1225_p11 }
  0x22   :  { %p1228_p0 = pnand %p1227_p13, %p1221_p10 }
  0x24   :  { %1231 = shalt.err (!%p1228_p0)
}
  0x25   :  { %53 = dma.hbm_to_vmem [thread:$0]  %s1479_s3, 2048, %s48_s11, [#allocation6], %s1284_s7, %s1284_s7, %s1285_s8  }
  0x26   :  { %1272 = dma.done.wait [#allocation3], 4096  }
  0x27   :  { %1273 = vsyncadd [#allocation3], 4294963200 }
  0x28   :  { %1274 = dma.done.wait [#allocation6], 3072  }
  0x29   :  { %1275 = vsyncadd [#allocation6], 4294964224  ;;  %v1076_v0 = vld [vmem:[#allocation5 + $0x38] sm:$0xff]   ;;  %v1077_v1 = vld [vmem:[#allocation5 + $0x30] sm:$0xff]  }
  0x2a   :  { %1002 = vmatprep.subr.bf16.mxu0 %v1076_v0  ;;  %v1078_v2 = vld [vmem:[#allocation5 + $0x28] sm:$0xff]   ;;  %v1079_v3 = vld [vmem:[#allocation5 + $0x20] sm:$0xff]   ;;  %v1080_v7 = vld [vmem:[#allocation5 + $0x18] sm:$0xff]  }
  0x2b   :  { %1003 = vmatpush3.bf16.msra.mxu0 %v1076_v0  ;;  %v66_v4 = vld [vmem:[#allocation2] sm:$0xff]  ;;  %v67_v5 = vld [vmem:[#allocation2 + $0x8] sm:$0xff]  ;;  %v1081_v8 = vld [vmem:[#allocation5 + $0x10] sm:$0xff]  }
  0x2c   :  { %1004 = vmatprep.subr.bf16.mxu0 %v1077_v1  ;;  %v98_v6 = vpack.c.bf16 %v67_v5, %v66_v4  ;;  %v1082_v9 = vld [vmem:[#allocation5 + $0x8] sm:$0xff]   ;;  %v1086_v10 = vld [vmem:[#allocation7 + $0x74] ss:$8 sps:$4 sm:$0xff]   ;;  %v1084_v11 = vld [vmem:[#allocation7 + $0x70] ss:$8 sps:$4 sm:$0xff]  }
  0x2d   :  { %v1089_v12 = vld [vmem:[#allocation7 + $0x64] ss:$8 sps:$4 sm:$0xff]   ;;  %1050 = vmatprep.subr.bf16.mxu1 %v1086_v10  ;;  %v1087_v14 = vld [vmem:[#allocation7 + $0x60] ss:$8 sps:$4 sm:$0xff]   ;;  %v1092_v15 = vld [vmem:[#allocation7 + $0x54] ss:$8 sps:$4 sm:$0xff]  }
  0x2e   :  { %1018 = vmatprep.mubr.bf16.mxu0 %v98_v6  ;;  %1058 = vmatpush1.bf16.msra.mxu1 %v1084_v11  ;;  %v1083_v13 = vld [vmem:[#allocation5] sm:$0xff]   ;;  %v68_v16 = vld [vmem:[#allocation2 + $0x10] sm:$0xff]  ;;  %v69_v17 = vld [vmem:[#allocation2 + $0x18] sm:$0xff] }
  0x2f   :  { %1005 = vmatpush3.bf16.msra.mxu0 %v1077_v1  ;;  %1051 = vmatprep.subr.bf16.mxu1 %v1089_v12  ;;  %v70_v18 = vld [vmem:[#allocation2 + $0x20] sm:$0xff]  ;;  %v71_v19 = vld [vmem:[#allocation2 + $0x28] sm:$0xff]  ;;  %v1090_v20 = vld [vmem:[#allocation7 + $0x50] ss:$8 sps:$4 sm:$0xff]   ;;  %v99_v22 = vpack.c.bf16 %v69_v17, %v68_v16 }
  0x30   :  { %1006 = vmatprep.subr.bf16.mxu0 %v1078_v2  ;;  %v1095_v21 = vld [vmem:[#allocation7 + $0x44] ss:$8 sps:$4 sm:$0xff]   ;;  %v100_v23 = vpack.c.bf16 %v71_v19, %v70_v18  ;;  %v1093_v24 = vld [vmem:[#allocation7 + $0x40] ss:$8 sps:$4 sm:$0xff]   ;;  %v1098_v25 = vld [vmem:[#allocation7 + $0x34] ss:$8 sps:$4 sm:$0xff]  }
  0x31   :  { %v72_v26 = vld [vmem:[#allocation2 + $0x30] sm:$0xff]  ;;  %v73_v27 = vld [vmem:[#allocation2 + $0x38] sm:$0xff]  ;;  %v74_v28 = vld [vmem:[#allocation2 + $0x40] sm:$0xff] }
  0x32   :  { %1059 = vmatpush1.bf16.msra.mxu1 %v1087_v14  ;;  %v75_v29 = vld [vmem:[#allocation2 + $0x48] sm:$0xff]  ;;  %v1096_v30 = vld [vmem:[#allocation7 + $0x30] ss:$8 sps:$4 sm:$0xff]   ;;  %v101_v31 = vpack.c.bf16 %v73_v27, %v72_v26  ;;  %v78_v35 = vld [vmem:[#allocation2 + $0x60] sm:$0xff] }
  0x33   :  { %1007 = vmatpush3.bf16.msra.mxu0 %v1078_v2  ;;  %1052 = vmatprep.subr.bf16.mxu1 %v1092_v15  ;;  %v102_v32 = vpack.c.bf16 %v75_v29, %v74_v28  ;;  %v76_v33 = vld [vmem:[#allocation2 + $0x50] sm:$0xff]  ;;  %v77_v34 = vld [vmem:[#allocation2 + $0x58] sm:$0xff]  ;;  %v79_v36 = vld [vmem:[#allocation2 + $0x68] sm:$0xff] }
  0x34   :  { %1008 = vmatprep.subr.bf16.mxu0 %v1079_v3  ;;  %v103_v37 = vpack.c.bf16 %v77_v34, %v76_v33  ;;  %v104_v38 = vpack.c.bf16 %v79_v36, %v78_v35  ;;  %v80_v39 = vld [vmem:[#allocation2 + $0x70] sm:$0xff]  ;;  %v81_v40 = vld [vmem:[#allocation2 + $0x78] sm:$0xff]  ;;  %v82_v41 = vld [vmem:[#allocation2 + $0x80] sm:$0xff] }
  0x35   :  { %v83_v42 = vld [vmem:[#allocation2 + $0x88] sm:$0xff]  ;;  %v105_v43 = vpack.c.bf16 %v81_v40, %v80_v39  ;;  %v84_v45 = vld [vmem:[#allocation2 + $0x90] sm:$0xff]  ;;  %v85_v46 = vld [vmem:[#allocation2 + $0x98] sm:$0xff] }
  0x36   :  { %1060 = vmatpush1.bf16.msra.mxu1 %v1090_v20  ;;  %v106_v44 = vpack.c.bf16 %v83_v42, %v82_v41  ;;  %v86_v47 = vld [vmem:[#allocation2 + $0xa0] sm:$0xff]  ;;  %v87_v48 = vld [vmem:[#allocation2 + $0xa8] sm:$0xff]  ;;  %v107_v49 = vpack.c.bf16 %v85_v46, %v84_v45  ;;  %v88_v51 = vld [vmem:[#allocation2 + $0xb0] sm:$0xff] }
  0x37   :  { %1009 = vmatpush3.bf16.msra.mxu0 %v1079_v3  ;;  %1053 = vmatprep.subr.bf16.mxu1 %v1095_v21  ;;  %v108_v50 = vpack.c.bf16 %v87_v48, %v86_v47  ;;  %v89_v52 = vld [vmem:[#allocation2 + $0xb8] sm:$0xff]  ;;  %v90_v53 = vld [vmem:[#allocation2 + $0xc0] sm:$0xff]  ;;  %v91_v54 = vld [vmem:[#allocation2 + $0xc8] sm:$0xff] }
  0x38   :  { %1010 = vmatprep.subr.bf16.mxu0 %v1080_v7  ;;  %v109_v55 = vpack.c.bf16 %v89_v52, %v88_v51  ;;  %v110_v56 = vpack.c.bf16 %v91_v54, %v90_v53  ;;  %v92_v57 = vld [vmem:[#allocation2 + $0xd0] sm:$0xff]  ;;  %v93_v58 = vld [vmem:[#allocation2 + $0xd8] sm:$0xff]  ;;  %v94_v59 = vld [vmem:[#allocation2 + $0xe0] sm:$0xff] }
  0x39   :  { %v95_v60 = vld [vmem:[#allocation2 + $0xe8] sm:$0xff]  ;;  %v111_v61 = vpack.c.bf16 %v93_v58, %v92_v57  ;;  %v96_v63 = vld [vmem:[#allocation2 + $0xf0] sm:$0xff]  ;;  %v97_v0 = vld [vmem:[#allocation2 + $0xf8] sm:$0xff] }
  0x3a   :  { %1061 = vmatpush1.bf16.msra.mxu1 %v1093_v24  ;;  %v112_v62 = vpack.c.bf16 %v95_v60, %v94_v59  ;;  %v113_v1 = vpack.c.bf16 %v97_v0, %v96_v63  ;;  %v1101_v2 = vld [vmem:[#allocation7 + $0x24] ss:$8 sps:$4 sm:$0xff]   ;;  %v1099_v3 = vld [vmem:[#allocation7 + $0x20] ss:$8 sps:$4 sm:$0xff]   ;;  %v1104_v4 = vld [vmem:[#allocation7 + $0x14] ss:$8 sps:$4 sm:$0xff]  }
  0x3b   :  { %1011 = vmatpush3.bf16.msra.mxu0 %v1080_v7  ;;  %1054 = vmatprep.subr.bf16.mxu1 %v1098_v25  ;;  %v1102_v5 = vld [vmem:[#allocation7 + $0x10] ss:$8 sps:$4 sm:$0xff]   ;;  %v1107_v6 = vld [vmem:[#allocation7 + $0x4] ss:$8 sps:$4 sm:$0xff]   ;;  %v1105_v7 = vld [vmem:[#allocation7] ss:$8 sps:$4 sm:$0xff]  }
  0x3c   :  { %1012 = vmatprep.subr.bf16.mxu0 %v1081_v8 }
  0x3e   :  { %1062 = vmatpush1.bf16.msra.mxu1 %v1096_v30 }
  0x3f   :  { %1013 = vmatpush3.bf16.msra.mxu0 %v1081_v8  ;;  %1055 = vmatprep.subr.bf16.mxu1 %v1101_v2  ;;  %v1287_v8 = vmov 0  }
  0x40   :  { %1014 = vmatprep.subr.bf16.mxu0 %v1082_v9  ;;  %574 = vmatprep.mubr.bf16.mxu1 %v1287_v8 }
  0x42   :  { %1063 = vmatpush1.bf16.msra.mxu1 %v1099_v3 }
  0x43   :  { %1015 = vmatpush3.bf16.msra.mxu0 %v1082_v9  ;;  %1056 = vmatprep.subr.bf16.mxu1 %v1104_v4 }
  0x44   :  { %1016 = vmatprep.subr.bf16.mxu0 %v1083_v13 }
  0x46   :  { %1064 = vmatpush1.bf16.msra.mxu1 %v1102_v5 }
  0x47   :  { %1017 = vmatpush3.bf16.msra.mxu0 %v1083_v13  ;;  %1057 = vmatprep.subr.bf16.mxu1 %v1107_v6 }
  0x48   :  { %502 = vmatprep.subr.bf16.mxu0 %v1086_v10 }
  0x4a   :  { %1019 = vmatmul.mubr.bf16.vlgmr.msra.gmra.mxu0 %v99_v22  ;;  %1065 = vmatpush1.bf16.msra.mxu1 %v1105_v7 }
  0x4b   :  { %1022 = vmatprep.mubr.bf16.mxu0 %v100_v23  ;;  %503 = vmatpush1.bf16.msra.mxu0 %v1084_v11  ;;  %v1345_v11 = vld [vmem:[%s1478_s2] ss:$0 sm:$0xff] }
  0x4c   :  { %504 = vmatprep.subr.bf16.mxu0 %v1089_v12 }
  0x4f   :  { %505 = vmatpush1.bf16.msra.mxu0 %v1087_v14 }
  0x50   :  { %506 = vmatprep.subr.bf16.mxu0 %v1092_v15 }
  0x52   :  { %1023 = vmatmul.mubr.bf16.gmra.mxu0 %v101_v31 }
  0x53   :  { %1026 = vmatprep.mubr.bf16.mxu0 %v102_v32  ;;  %507 = vmatpush1.bf16.msra.mxu0 %v1090_v20 }
  0x54   :  { %508 = vmatprep.subr.bf16.mxu0 %v1095_v21 }
  0x57   :  { %509 = vmatpush1.bf16.msra.mxu0 %v1093_v24 }
  0x58   :  { %510 = vmatprep.subr.bf16.mxu0 %v1098_v25 }
  0x5a   :  { %1027 = vmatmul.mubr.bf16.gmra.mxu0 %v103_v37 }
  0x5b   :  { %1030 = vmatprep.mubr.bf16.mxu0 %v104_v38  ;;  %511 = vmatpush1.bf16.msra.mxu0 %v1096_v30 }
  0x5c   :  { %512 = vmatprep.subr.bf16.mxu0 %v1101_v2 }
  0x5f   :  { %513 = vmatpush1.bf16.msra.mxu0 %v1099_v3 }
  0x60   :  { %514 = vmatprep.subr.bf16.mxu0 %v1104_v4 }
  0x62   :  { %1031 = vmatmul.mubr.bf16.gmra.mxu0 %v105_v43 }
  0x63   :  { %1034 = vmatprep.mubr.bf16.mxu0 %v106_v44  ;;  %515 = vmatpush1.bf16.msra.mxu0 %v1102_v5 }
  0x64   :  { %516 = vmatprep.subr.bf16.mxu0 %v1107_v6 }
  0x67   :  { %517 = vmatpush1.bf16.msra.mxu0 %v1105_v7 }
  0x6a   :  { %1035 = vmatmul.mubr.bf16.gmra.mxu0 %v107_v49 }
  0x6b   :  { %1038 = vmatprep.mubr.bf16.mxu0 %v108_v50 }
  0x72   :  { %1039 = vmatmul.mubr.bf16.gmra.mxu0 %v109_v55 }
  0x73   :  { %1042 = vmatprep.mubr.bf16.mxu0 %v110_v56 }
  0x7a   :  { %1043 = vmatmul.mubr.bf16.gmra.mxu0 %v111_v61 }
  0x7b   :  { %1046 = vmatprep.mubr.bf16.mxu0 %v112_v62 }
  0x82   :  { %1047 = vmatmul.mubr.bf16.gmra.mxu0 %v113_v1 }
  0x83   :  { %534 = vmatprep.mubr.bf16.mxu0 %v1287_v8 }
 0x10a   :  { %v1020_v9 = vpop.f32.mrf.mxu0 }
 0x10b   :  { %v228_v23 = vadd.f32 %v1020_v9, %v1345_v11 }
 0x10c   :  { %v219_v10 = vpop.f32.mrf.mxu0 }
 0x10d   :  { %v220_v13 = vadd.f32 %v1345_v11, %v219_v10  ;;  %v348_v27 = vmax.f32 %v228_v23, 0.0 }
 0x10e   :  { %v1021_v12 = vpop.f32.mrf.mxu0 }
 0x10f   :  { %v346_v17 = vmax.f32 %v220_v13, 0.0  ;;  %v231_v20 = vadd.f32 %v1021_v12, %v1345_v11 }
 0x110   :  { %v222_v14 = vpop.f32.mrf.mxu0 }
 0x111   :  { %v223_v15 = vadd.f32 %v1345_v11, %v222_v14  ;;  %v349_v25 = vmax.f32 %v231_v20, 0.0 }
 0x112   :  { %v1024_v16 = vpop.f32.mrf.mxu0 }
 0x113   :  { %v347_v18 = vmax.f32 %v223_v15, 0.0  ;;  %v379_v29 = vpack.c.bf16 %v349_v25, %v348_v27  ;;  %v244_v47 = vadd.f32 %v1024_v16, %v1345_v11 }
 0x114   :  { %v235_v19 = vpop.f32.mrf.mxu0 }
 0x115   :  { %v378_v21 = vpack.c.bf16 %v347_v18, %v346_v17  ;;  %v236_v32 = vadd.f32 %v1345_v11, %v235_v19  ;;  %v352_v52 = vmax.f32 %v244_v47, 0.0 }
 0x116   :  { %v1025_v22 = vpop.f32.mrf.mxu0 }
 0x117   :  { %535 = vmatmul.mubr.bf16.vlgmr.msra.gmra.mxu0 %v378_v21  ;;  %v350_v38 = vmax.f32 %v236_v32, 0.0  ;;  %v247_v42 = vadd.f32 %v1025_v22, %v1345_v11 }
 0x118   :  { %v238_v24 = vpop.f32.mrf.mxu0  ;;  %544 = vmatprep.mubr.bf16.mxu0 %v1287_v8 }
 0x119   :  { %v239_v30 = vadd.f32 %v1345_v11, %v238_v24  ;;  %v353_v49 = vmax.f32 %v247_v42, 0.0 }
 0x11a   :  { %v1028_v26 = vpop.f32.mrf.mxu0 }
 0x11b   :  { %v351_v35 = vmax.f32 %v239_v30, 0.0  ;;  %v260_v48 = vadd.f32 %v1028_v26, %v1345_v11  ;;  %v381_v54 = vpack.c.bf16 %v353_v49, %v352_v52 }
 0x11c   :  { %v251_v28 = vpop.f32.mrf.mxu0 }
 0x11d   :  { %v252_v33 = vadd.f32 %v1345_v11, %v251_v28  ;;  %v380_v43 = vpack.c.bf16 %v351_v35, %v350_v38  ;;  %v356_v53 = vmax.f32 %v260_v48, 0.0 }
 0x11e   :  { %v1029_v31 = vpop.f32.mrf.mxu0 }
 0x11f   :  { %545 = vmatmul.mubr.bf16.gmra.mxu0 %v379_v29  ;;  %v354_v39 = vmax.f32 %v252_v33, 0.0  ;;  %v263_v44 = vadd.f32 %v1029_v31, %v1345_v11 }
 0x120   :  { %v254_v34 = vpop.f32.mrf.mxu0  ;;  %554 = vmatprep.mubr.bf16.mxu0 %v1287_v8 }
 0x121   :  { %v255_v36 = vadd.f32 %v1345_v11, %v254_v34  ;;  %v357_v50 = vmax.f32 %v263_v44, 0.0 }
 0x122   :  { %v1032_v37 = vpop.f32.mrf.mxu0 }
 0x123   :  { %v355_v40 = vmax.f32 %v255_v36, 0.0  ;;  %v383_v55 = vpack.c.bf16 %v357_v50, %v356_v53  ;;  %v276_v62 = vadd.f32 %v1032_v37, %v1345_v11 }
 0x124   :  { %v267_v41 = vpop.f32.mrf.mxu0 }
 0x125   :  { %v382_v45 = vpack.c.bf16 %v355_v40, %v354_v39  ;;  %v268_v56 = vadd.f32 %v1345_v11, %v267_v41  ;;  %v360_v2 = vmax.f32 %v276_v62, 0.0 }
 0x126   :  { %v1033_v46 = vpop.f32.mrf.mxu0 }
 0x127   :  { %555 = vmatmul.mubr.bf16.gmra.mxu0 %v380_v43  ;;  %575 = vmatmul.mubr.bf16.vlgmr.msra.gmra.mxu1 %v382_v45  ;;  %v358_v59 = vmax.f32 %v268_v56, 0.0  ;;  %v279_v63 = vadd.f32 %v1033_v46, %v1345_v11 }
 0x128   :  { %564 = vmatprep.mubr.bf16.mxu0 %v1287_v8  ;;  %584 = vmatprep.mubr.bf16.mxu1 %v1287_v8  ;;  %v270_v51 = vpop.f32.mrf.mxu0 }
 0x129   :  { %v271_v57 = vadd.f32 %v1345_v11, %v270_v51  ;;  %v361_v3 = vmax.f32 %v279_v63, 0.0  ;;  %v410_v63 = vld [vmem:[%s1480_s4] sm:$0x3]  ;;  %s1288_s4 = smov [#allocation8]  }
 0x12a   :  { %v1036_v58 = vpop.f32.mrf.mxu0  ;;  %s892_s16 = sshll.u32 %s1288_s4, 4  ;;  %s893_s16 = int_to_ptr.vmem [resolvable:$true] %s892_s16 }
 0x12b   :  { %v359_v60 = vmax.f32 %v271_v57, 0.0  ;;  %v385_v5 = vpack.c.bf16 %v361_v3, %v360_v2  ;;  %v292_v14 = vadd.f32 %v1036_v58, %v1345_v11  ;;  %s1232_s17 = scalar_lea.vmem %s893_s16, 4096  ;;  %p1237_p2 = scmp.lt.s32.totalorder %s893_s16, %s893_s16 }
 0x12c   :  { %v283_v61 = vpop.f32.mrf.mxu0  ;;  %p1233_p1 = scmp.ne.s32.totalorder %s893_s16, %s1232_s17  ;;  %p1238_p3 = scmp.lt.s32.totalorder %s1232_s17, %s1232_s17 }
 0x12d   :  { %v384_v0 = vpack.c.bf16 %v359_v60, %v358_v59  ;;  %v284_v6 = vadd.f32 %v1345_v11, %v283_v61  ;;  %v364_v18 = vmax.f32 %v292_v14, 0.0  ;;  %v412_v60 = vlaneseq }
 0x12e   :  { %v1037_v1 = vpop.f32.mrf.mxu0  ;;  %p1239_p4 = por %p1238_p3, %p1237_p2 }
 0x12f   :  { %565 = vmatmul.mubr.bf16.gmra.mxu0 %v381_v54  ;;  %585 = vmatmul.mubr.bf16.gmra.mxu1 %v383_v55  ;;  %v362_v10 = vmax.f32 %v284_v6, 0.0  ;;  %v295_v15 = vadd.f32 %v1037_v1, %v1345_v11  ;;  %v413_v61 = vshrl.u32 %v412_v60, 7 }
 0x130   :  { %594 = vmatprep.mubr.bf16.mxu1 %v1287_v8  ;;  %v286_v4 = vpop.f32.mrf.mxu0  ;;  %p1240_p5 = pnand %p1239_p4, %p1233_p1 }
 0x131   :  { %v287_v7 = vadd.f32 %v1345_v11, %v286_v4  ;;  %v365_v19 = vmax.f32 %v295_v15, 0.0  ;;  %v414_v62 = vsub.s32 0, %v413_v61 }
 0x132   :  { %v1040_v9 = vpop.f32.mrf.mxu0 }
 0x133   :  { %v363_v12 = vmax.f32 %v287_v7, 0.0  ;;  %v387_v21 = vpack.c.bf16 %v365_v19, %v364_v18  ;;  %v308_v28 = vadd.f32 %v1040_v9, %v1345_v11  ;;  %v1396_v1 = vrot.slane %v410_v63, %v414_v62 }
 0x134   :  { %v299_v13 = vpop.f32.mrf.mxu0 }
 0x135   :  { %v386_v16 = vpack.c.bf16 %v363_v12, %v362_v10  ;;  %v300_v22 = vadd.f32 %v1345_v11, %v299_v13  ;;  %v368_v32 = vmax.f32 %v308_v28, 0.0 }
 0x136   :  { %v1041_v17 = vpop.f32.mrf.mxu0 }
 0x137   :  { %595 = vmatmul.mubr.bf16.gmra.mxu1 %v384_v0  ;;  %v366_v25 = vmax.f32 %v300_v22, 0.0  ;;  %v311_v29 = vadd.f32 %v1041_v17, %v1345_v11  ;;  %v418_v0 = vsub.s32 1, %v413_v61 }
 0x138   :  { %604 = vmatprep.mubr.bf16.mxu1 %v1287_v8  ;;  %v302_v20 = vpop.f32.mrf.mxu0 }
 0x139   :  { %v303_v23 = vadd.f32 %v1345_v11, %v302_v20  ;;  %v369_v33 = vmax.f32 %v311_v29, 0.0  ;;  %v1398_v2 = vrot.slane %v410_v63, %v418_v0 }
 0x13a   :  { %v1044_v24 = vpop.f32.mrf.mxu0 }
 0x13b   :  { %v367_v26 = vmax.f32 %v303_v23, 0.0  ;;  %v389_v35 = vpack.c.bf16 %v369_v33, %v368_v32  ;;  %v324_v42 = vadd.f32 %v1044_v24, %v1345_v11 }
 0x13c   :  { %v315_v27 = vpop.f32.mrf.mxu0 }
 0x13d   :  { %v388_v30 = vpack.c.bf16 %v367_v26, %v366_v25  ;;  %v316_v36 = vadd.f32 %v1345_v11, %v315_v27  ;;  %v372_v46 = vmax.f32 %v324_v42, 0.0 }
 0x13e   :  { %v1045_v31 = vpop.f32.mrf.mxu0 }
 0x13f   :  { %605 = vmatmul.mubr.bf16.gmra.mxu1 %v385_v5  ;;  %v370_v39 = vmax.f32 %v316_v36, 0.0  ;;  %v327_v43 = vadd.f32 %v1045_v31, %v1345_v11 }
 0x140   :  { %614 = vmatprep.mubr.bf16.mxu1 %v1287_v8  ;;  %v318_v34 = vpop.f32.mrf.mxu0 }
 0x141   :  { %v319_v37 = vadd.f32 %v1345_v11, %v318_v34  ;;  %v373_v47 = vmax.f32 %v327_v43, 0.0 }
 0x142   :  { %v1048_v38 = vpop.f32.mrf.mxu0 }
 0x143   :  { %v371_v40 = vmax.f32 %v319_v37, 0.0  ;;  %v391_v49 = vpack.c.bf16 %v373_v47, %v372_v46  ;;  %v340_v54 = vadd.f32 %v1048_v38, %v1345_v11 }
 0x144   :  { %v331_v41 = vpop.f32.mrf.mxu0 }
 0x145   :  { %v390_v44 = vpack.c.bf16 %v371_v40, %v370_v39  ;;  %v332_v50 = vadd.f32 %v1345_v11, %v331_v41  ;;  %v376_v57 = vmax.f32 %v340_v54, 0.0 }
 0x146   :  { %v1049_v45 = vpop.f32.mrf.mxu0 }
 0x147   :  { %615 = vmatmul.mubr.bf16.gmra.mxu1 %v386_v16  ;;  %v374_v52 = vmax.f32 %v332_v50, 0.0  ;;  %v343_v55 = vadd.f32 %v1049_v45, %v1345_v11 }
 0x148   :  { %624 = vmatprep.mubr.bf16.mxu1 %v1287_v8  ;;  %v334_v48 = vpop.f32.mrf.mxu0 }
 0x149   :  { %v335_v51 = vadd.f32 %v1345_v11, %v334_v48  ;;  %v377_v58 = vmax.f32 %v343_v55, 0.0 }
 0x14b   :  { %v375_v53 = vmax.f32 %v335_v51, 0.0  ;;  %v393_v59 = vpack.c.bf16 %v377_v58, %v376_v57 }
 0x14d   :  { %v392_v56 = vpack.c.bf16 %v375_v53, %v374_v52 }
 0x14f   :  { %625 = vmatmul.mubr.bf16.gmra.mxu1 %v387_v21 }
 0x150   :  { %634 = vmatprep.mubr.bf16.mxu1 %v1287_v8 }
 0x157   :  { %635 = vmatmul.mubr.bf16.gmra.mxu1 %v388_v30 }
 0x158   :  { %644 = vmatprep.mubr.bf16.mxu1 %v1287_v8 }
 0x15f   :  { %645 = vmatmul.mubr.bf16.gmra.mxu1 %v389_v35 }
 0x160   :  { %654 = vmatprep.mubr.bf16.mxu1 %v1287_v8 }
 0x167   :  { %655 = vmatmul.mubr.bf16.gmra.mxu1 %v390_v44 }
 0x168   :  { %664 = vmatprep.mubr.bf16.mxu1 %v1287_v8 }
 0x16f   :  { %665 = vmatmul.mubr.bf16.gmra.mxu1 %v391_v49 }
 0x170   :  { %674 = vmatprep.mubr.bf16.mxu1 %v1287_v8 }
 0x177   :  { %675 = vmatmul.mubr.bf16.gmra.mxu1 %v392_v56 }
 0x178   :  { %684 = vmatprep.mubr.bf16.mxu1 %v1287_v8 }
 0x17f   :  { %685 = vmatmul.mubr.bf16.gmra.mxu1 %v393_v59 }
 0x1d7   :  { %v536_v11 = vpop.f32.mrf.mxu0 }
 0x1d8   :  { %v537_v3 = vadd.f32 %v536_v11, %v1396_v1 }
 0x1d9   :  { %v538_v8 = vpop.f32.mrf.mxu0 }
 0x1da   :  { %695 = vst [vmem:[#allocation8] sm:$0xff] %v537_v3  ;;  %v539_v4 = vadd.f32 %v538_v8, %v1398_v2 }
 0x1db   :  { %v540_v5 = vpop.f32.mrf.mxu0 }
 0x1dc   :  { %v946_v6 = vclamps-f32 %v539_v4, 15.0  ;;  %v541_v7 = vadd.f32 %v540_v5, %v1396_v1 }
 0x1dd   :  { %v542_v9 = vpop.f32.mrf.mxu0 }
 0x1de   :  { %v791_v10 = vmul.f32 1.442695, %v946_v6  ;;  %696 = vst [vmem:[#allocation8 + $0x8] sm:$0xff] %v541_v7  ;;  %v543_v12 = vadd.f32 %v542_v9, %v1398_v2 }
 0x1df   :  { %v546_v13 = vpop.f32.mrf.mxu0 }
 0x1e0   :  { %1108 = vpow2.f32 %v791_v10  ;;  %v947_v14 = vclamps-f32 %v543_v12, 15.0  ;;  %v547_v15 = vadd.f32 %v546_v13, %v1396_v1 }
 0x1e1   :  { %v548_v16 = vpop.f32.mrf.mxu0 }
 0x1e2   :  { %v793_v17 = vmul.f32 1.442695, %v947_v14  ;;  %697 = vst [vmem:[#allocation8 + $0x10] sm:$0xff] %v547_v15  ;;  %v549_v18 = vadd.f32 %v548_v16, %v1398_v2 }
 0x1e3   :  { %v550_v19 = vpop.f32.mrf.mxu0 }
 0x1e4   :  { %1110 = vpow2.f32 %v793_v17  ;;  %v948_v20 = vclamps-f32 %v549_v18, 15.0  ;;  %v551_v21 = vadd.f32 %v550_v19, %v1396_v1 }
 0x1e5   :  { %v552_v22 = vpop.f32.mrf.mxu0 }
 0x1e6   :  { %v795_v23 = vmul.f32 1.442695, %v948_v20  ;;  %698 = vst [vmem:[#allocation8 + $0x18] sm:$0xff] %v551_v21  ;;  %v553_v24 = vadd.f32 %v552_v22, %v1398_v2 }
 0x1e7   :  { %v556_v25 = vpop.f32.mrf.mxu0  ;;  %v576_v26 = vpop.f32.mrf.mxu1 }
 0x1e8   :  { %1112 = vpow2.f32 %v795_v23  ;;  %v949_v27 = vclamps-f32 %v553_v24, 15.0  ;;  %v557_v28 = vadd.f32 %v556_v25, %v1396_v1  ;;  %v577_v29 = vadd.f32 %v576_v26, %v1396_v1 }
 0x1e9   :  { %v558_v30 = vpop.f32.mrf.mxu0  ;;  %v578_v31 = vpop.f32.mrf.mxu1 }
 0x1ea   :  { %v797_v32 = vmul.f32 1.442695, %v949_v27  ;;  %699 = vst [vmem:[#allocation8 + $0x20] sm:$0xff] %v557_v28  ;;  %703 = vst [vmem:[#allocation8 + $0x40] sm:$0xff] %v577_v29  ;;  %v559_v33 = vadd.f32 %v558_v30, %v1398_v2  ;;  %v579_v34 = vadd.f32 %v578_v31, %v1398_v2 }
 0x1eb   :  { %v560_v35 = vpop.f32.mrf.mxu0  ;;  %v580_v36 = vpop.f32.mrf.mxu1 }
 0x1ec   :  { %1114 = vpow2.f32 %v797_v32  ;;  %v950_v37 = vclamps-f32 %v559_v33, 15.0  ;;  %v954_v38 = vclamps-f32 %v579_v34, 15.0  ;;  %v561_v39 = vadd.f32 %v560_v35, %v1396_v1 }
 0x1ed   :  { %v1109_v40 = vpop.eup %1108  ;;  %v581_v41 = vadd.f32 %v580_v36, %v1396_v1  ;;  %v562_v42 = vpop.f32.mrf.mxu0 }
 0x1ee   :  { %v582_v43 = vpop.f32.mrf.mxu1  ;;  %855 = vst [vmem:[#allocation9] sm:$0xff] %v1109_v40  ;;  %v799_v44 = vmul.f32 1.442695, %v950_v37  ;;  %v807_v45 = vmul.f32 1.442695, %v954_v38  ;;  %700 = vst [vmem:[#allocation8 + $0x28] sm:$0xff] %v561_v39  ;;  %v563_v46 = vadd.f32 %v562_v42, %v1398_v2 }
 0x1ef   :  { %v583_v47 = vadd.f32 %v582_v43, %v1398_v2  ;;  %704 = vst [vmem:[#allocation8 + $0x48] sm:$0xff] %v581_v41  ;;  %v566_v48 = vpop.f32.mrf.mxu0 }
 0x1f0   :  { %v586_v49 = vpop.f32.mrf.mxu1  ;;  %1116 = vpow2.f32 %v799_v44  ;;  %v951_v50 = vclamps-f32 %v563_v46, 15.0  ;;  %v567_v52 = vadd.f32 %v566_v48, %v1396_v1 }
 0x1f1   :  { %v955_v51 = vclamps-f32 %v583_v47, 15.0  ;;  %v1111_v53 = vpop.eup %1110  ;;  %1118 = vpow2.f32 %v807_v45  ;;  %v587_v54 = vadd.f32 %v586_v49, %v1396_v1  ;;  %v568_v55 = vpop.f32.mrf.mxu0 }
 0x1f2   :  { %v588_v56 = vpop.f32.mrf.mxu1  ;;  %856 = vst [vmem:[#allocation9 + $0x8] sm:$0xff] %v1111_v53  ;;  %v801_v57 = vmul.f32 1.442695, %v951_v50  ;;  %701 = vst [vmem:[#allocation8 + $0x30] sm:$0xff] %v567_v52  ;;  %v569_v59 = vadd.f32 %v568_v55, %v1398_v2 }
 0x1f3   :  { %v809_v58 = vmul.f32 1.442695, %v955_v51  ;;  %v589_v60 = vadd.f32 %v588_v56, %v1398_v2  ;;  %705 = vst [vmem:[#allocation8 + $0x50] sm:$0xff] %v587_v54  ;;  %v570_v61 = vpop.f32.mrf.mxu0 }
 0x1f4   :  { %v590_v62 = vpop.f32.mrf.mxu1  ;;  %1120 = vpow2.f32 %v801_v57  ;;  %v952_v63 = vclamps-f32 %v569_v59, 15.0  ;;  %v571_v11 = vadd.f32 %v570_v61, %v1396_v1 }
 0x1f5   :  { %v956_v0 = vclamps-f32 %v589_v60, 15.0  ;;  %v1113_v3 = vpop.eup %1112  ;;  %1122 = vpow2.f32 %v809_v58  ;;  %v591_v8 = vadd.f32 %v590_v62, %v1396_v1  ;;  %v572_v4 = vpop.f32.mrf.mxu0 }
 0x1f6   :  { %v592_v5 = vpop.f32.mrf.mxu1  ;;  %857 = vst [vmem:[#allocation9 + $0x10] sm:$0xff] %v1113_v3  ;;  %v803_v6 = vmul.f32 1.442695, %v952_v63  ;;  %702 = vst [vmem:[#allocation8 + $0x38] sm:$0xff] %v571_v11  ;;  %v573_v9 = vadd.f32 %v572_v4, %v1398_v2 }
 0x1f7   :  { %v811_v7 = vmul.f32 1.442695, %v956_v0  ;;  %v593_v10 = vadd.f32 %v592_v5, %v1398_v2  ;;  %706 = vst [vmem:[#allocation8 + $0x58] sm:$0xff] %v591_v8 }
 0x1f8   :  { %v596_v12 = vpop.f32.mrf.mxu1  ;;  %1124 = vpow2.f32 %v803_v6  ;;  %v953_v13 = vclamps-f32 %v573_v9, 15.0 }
 0x1f9   :  { %v957_v14 = vclamps-f32 %v593_v10, 15.0  ;;  %v597_v15 = vadd.f32 %v596_v12, %v1396_v1  ;;  %v1115_v16 = vpop.eup %1114  ;;  %1126 = vpow2.f32 %v811_v7 }
 0x1fa   :  { %v598_v17 = vpop.f32.mrf.mxu1  ;;  %858 = vst [vmem:[#allocation9 + $0x18] sm:$0xff] %v1115_v16  ;;  %v805_v18 = vmul.f32 1.442695, %v953_v13 }
 0x1fb   :  { %v813_v19 = vmul.f32 1.442695, %v957_v14  ;;  %707 = vst [vmem:[#allocation8 + $0x60] sm:$0xff] %v597_v15  ;;  %v599_v20 = vadd.f32 %v598_v17, %v1398_v2 }
 0x1fc   :  { %v600_v21 = vpop.f32.mrf.mxu1  ;;  %1128 = vpow2.f32 %v805_v18 }
 0x1fd   :  { %v958_v22 = vclamps-f32 %v599_v20, 15.0  ;;  %v601_v23 = vadd.f32 %v600_v21, %v1396_v1  ;;  %v1117_v24 = vpop.eup %1116  ;;  %1130 = vpow2.f32 %v813_v19 }
 0x1fe   :  { %v602_v25 = vpop.f32.mrf.mxu1  ;;  %v1119_v26 = vpop.eup %1118  ;;  %859 = vst [vmem:[#allocation9 + $0x20] sm:$0xff] %v1117_v24 }
 0x1ff   :  { %v815_v27 = vmul.f32 1.442695, %v958_v22  ;;  %708 = vst [vmem:[#allocation8 + $0x68] sm:$0xff] %v601_v23  ;;  %v603_v28 = vadd.f32 %v602_v25, %v1398_v2  ;;  %863 = vst [vmem:[#allocation9 + $0x40] sm:$0xff] %v1119_v26 }
 0x200   :  { %v606_v29 = vpop.f32.mrf.mxu1 }
 0x201   :  { %1132 = vpow2.f32 %v815_v27  ;;  %v959_v30 = vclamps-f32 %v603_v28, 15.0  ;;  %v607_v31 = vadd.f32 %v606_v29, %v1396_v1  ;;  %v1121_v32 = vpop.eup %1120 }
 0x202   :  { %v608_v33 = vpop.f32.mrf.mxu1  ;;  %v1123_v34 = vpop.eup %1122  ;;  %860 = vst [vmem:[#allocation9 + $0x28] sm:$0xff] %v1121_v32 }
 0x203   :  { %v817_v35 = vmul.f32 1.442695, %v959_v30  ;;  %709 = vst [vmem:[#allocation8 + $0x70] sm:$0xff] %v607_v31  ;;  %v609_v36 = vadd.f32 %v608_v33, %v1398_v2  ;;  %864 = vst [vmem:[#allocation9 + $0x48] sm:$0xff] %v1123_v34 }
 0x204   :  { %v610_v37 = vpop.f32.mrf.mxu1 }
 0x205   :  { %1134 = vpow2.f32 %v817_v35  ;;  %v960_v38 = vclamps-f32 %v609_v36, 15.0  ;;  %v611_v39 = vadd.f32 %v610_v37, %v1396_v1  ;;  %v1125_v40 = vpop.eup %1124 }
 0x206   :  { %v612_v41 = vpop.f32.mrf.mxu1  ;;  %v1127_v42 = vpop.eup %1126  ;;  %861 = vst [vmem:[#allocation9 + $0x30] sm:$0xff] %v1125_v40 }
 0x207   :  { %v819_v43 = vmul.f32 1.442695, %v960_v38  ;;  %710 = vst [vmem:[#allocation8 + $0x78] sm:$0xff] %v611_v39  ;;  %v613_v44 = vadd.f32 %v612_v41, %v1398_v2  ;;  %865 = vst [vmem:[#allocation9 + $0x50] sm:$0xff] %v1127_v42 }
 0x208   :  { %v616_v45 = vpop.f32.mrf.mxu1 }
 0x209   :  { %1136 = vpow2.f32 %v819_v43  ;;  %v961_v46 = vclamps-f32 %v613_v44, 15.0  ;;  %v617_v47 = vadd.f32 %v616_v45, %v1396_v1  ;;  %v1129_v48 = vpop.eup %1128 }
 0x20a   :  { %v618_v49 = vpop.f32.mrf.mxu1  ;;  %v1131_v50 = vpop.eup %1130  ;;  %862 = vst [vmem:[#allocation9 + $0x38] sm:$0xff] %v1129_v48 }
 0x20b   :  { %v821_v51 = vmul.f32 1.442695, %v961_v46  ;;  %711 = vst [vmem:[#allocation8 + $0x80] sm:$0xff] %v617_v47  ;;  %v619_v52 = vadd.f32 %v618_v49, %v1398_v2  ;;  %866 = vst [vmem:[#allocation9 + $0x58] sm:$0xff] %v1131_v50 }
 0x20c   :  { %v620_v53 = vpop.f32.mrf.mxu1 }
 0x20d   :  { %1138 = vpow2.f32 %v821_v51  ;;  %v962_v54 = vclamps-f32 %v619_v52, 15.0  ;;  %v621_v55 = vadd.f32 %v620_v53, %v1396_v1 }
 0x20e   :  { %v1133_v56 = vpop.eup %1132  ;;  %v622_v57 = vpop.f32.mrf.mxu1 }
 0x20f   :  { %867 = vst [vmem:[#allocation9 + $0x60] sm:$0xff] %v1133_v56  ;;  %v823_v58 = vmul.f32 1.442695, %v962_v54  ;;  %712 = vst [vmem:[#allocation8 + $0x88] sm:$0xff] %v621_v55  ;;  %v623_v59 = vadd.f32 %v622_v57, %v1398_v2 }
 0x210   :  { %v626_v60 = vpop.f32.mrf.mxu1 }
 0x211   :  { %1140 = vpow2.f32 %v823_v58  ;;  %v963_v61 = vclamps-f32 %v623_v59, 15.0  ;;  %v627_v62 = vadd.f32 %v626_v60, %v1396_v1 }
 0x212   :  { %v1135_v63 = vpop.eup %1134  ;;  %v628_v0 = vpop.f32.mrf.mxu1 }
 0x213   :  { %868 = vst [vmem:[#allocation9 + $0x68] sm:$0xff] %v1135_v63  ;;  %v825_v11 = vmul.f32 1.442695, %v963_v61  ;;  %713 = vst [vmem:[#allocation8 + $0x90] sm:$0xff] %v627_v62  ;;  %v629_v3 = vadd.f32 %v628_v0, %v1398_v2 }
 0x214   :  { %v630_v8 = vpop.f32.mrf.mxu1 }
 0x215   :  { %1142 = vpow2.f32 %v825_v11  ;;  %v964_v4 = vclamps-f32 %v629_v3, 15.0  ;;  %v631_v5 = vadd.f32 %v630_v8, %v1396_v1 }
 0x216   :  { %v1137_v6 = vpop.eup %1136  ;;  %v632_v7 = vpop.f32.mrf.mxu1 }
 0x217   :  { %869 = vst [vmem:[#allocation9 + $0x70] sm:$0xff] %v1137_v6  ;;  %v827_v9 = vmul.f32 1.442695, %v964_v4  ;;  %714 = vst [vmem:[#allocation8 + $0x98] sm:$0xff] %v631_v5  ;;  %v633_v10 = vadd.f32 %v632_v7, %v1398_v2 }
 0x218   :  { %v636_v12 = vpop.f32.mrf.mxu1 }
 0x219   :  { %1144 = vpow2.f32 %v827_v9  ;;  %v965_v13 = vclamps-f32 %v633_v10, 15.0  ;;  %v637_v14 = vadd.f32 %v636_v12, %v1396_v1 }
 0x21a   :  { %v1139_v15 = vpop.eup %1138  ;;  %v638_v16 = vpop.f32.mrf.mxu1 }
 0x21b   :  { %870 = vst [vmem:[#allocation9 + $0x78] sm:$0xff] %v1139_v15  ;;  %v829_v17 = vmul.f32 1.442695, %v965_v13  ;;  %715 = vst [vmem:[#allocation8 + $0xa0] sm:$0xff] %v637_v14  ;;  %v639_v18 = vadd.f32 %v638_v16, %v1398_v2 }
 0x21c   :  { %v640_v19 = vpop.f32.mrf.mxu1 }
 0x21d   :  { %1146 = vpow2.f32 %v829_v17  ;;  %v966_v20 = vclamps-f32 %v639_v18, 15.0  ;;  %v641_v21 = vadd.f32 %v640_v19, %v1396_v1 }
 0x21e   :  { %v1141_v22 = vpop.eup %1140  ;;  %v642_v23 = vpop.f32.mrf.mxu1 }
 0x21f   :  { %871 = vst [vmem:[#allocation9 + $0x80] sm:$0xff] %v1141_v22  ;;  %v831_v24 = vmul.f32 1.442695, %v966_v20  ;;  %716 = vst [vmem:[#allocation8 + $0xa8] sm:$0xff] %v641_v21  ;;  %v643_v25 = vadd.f32 %v642_v23, %v1398_v2 }
 0x220   :  { %v646_v26 = vpop.f32.mrf.mxu1 }
 0x221   :  { %1148 = vpow2.f32 %v831_v24  ;;  %v967_v27 = vclamps-f32 %v643_v25, 15.0  ;;  %v647_v28 = vadd.f32 %v646_v26, %v1396_v1 }
 0x222   :  { %v1143_v29 = vpop.eup %1142  ;;  %v648_v30 = vpop.f32.mrf.mxu1 }
 0x223   :  { %872 = vst [vmem:[#allocation9 + $0x88] sm:$0xff] %v1143_v29  ;;  %v833_v31 = vmul.f32 1.442695, %v967_v27  ;;  %717 = vst [vmem:[#allocation8 + $0xb0] sm:$0xff] %v647_v28  ;;  %v649_v32 = vadd.f32 %v648_v30, %v1398_v2 }
 0x224   :  { %v650_v33 = vpop.f32.mrf.mxu1 }
 0x225   :  { %1150 = vpow2.f32 %v833_v31  ;;  %v968_v34 = vclamps-f32 %v649_v32, 15.0  ;;  %v651_v35 = vadd.f32 %v650_v33, %v1396_v1 }
 0x226   :  { %v1145_v36 = vpop.eup %1144  ;;  %v652_v37 = vpop.f32.mrf.mxu1 }
 0x227   :  { %873 = vst [vmem:[#allocation9 + $0x90] sm:$0xff] %v1145_v36  ;;  %v835_v38 = vmul.f32 1.442695, %v968_v34  ;;  %718 = vst [vmem:[#allocation8 + $0xb8] sm:$0xff] %v651_v35  ;;  %v653_v39 = vadd.f32 %v652_v37, %v1398_v2 }
 0x228   :  { %v656_v40 = vpop.f32.mrf.mxu1 }
 0x229   :  { %1152 = vpow2.f32 %v835_v38  ;;  %v969_v41 = vclamps-f32 %v653_v39, 15.0  ;;  %v657_v42 = vadd.f32 %v656_v40, %v1396_v1 }
 0x22a   :  { %v1147_v43 = vpop.eup %1146  ;;  %v658_v44 = vpop.f32.mrf.mxu1 }
 0x22b   :  { %874 = vst [vmem:[#allocation9 + $0x98] sm:$0xff] %v1147_v43  ;;  %v837_v45 = vmul.f32 1.442695, %v969_v41  ;;  %719 = vst [vmem:[#allocation8 + $0xc0] sm:$0xff] %v657_v42  ;;  %v659_v46 = vadd.f32 %v658_v44, %v1398_v2 }
 0x22c   :  { %v660_v47 = vpop.f32.mrf.mxu1 }
 0x22d   :  { %1154 = vpow2.f32 %v837_v45  ;;  %v970_v48 = vclamps-f32 %v659_v46, 15.0  ;;  %v661_v49 = vadd.f32 %v660_v47, %v1396_v1 }
 0x22e   :  { %v1149_v50 = vpop.eup %1148  ;;  %v662_v51 = vpop.f32.mrf.mxu1 }
 0x22f   :  { %875 = vst [vmem:[#allocation9 + $0xa0] sm:$0xff] %v1149_v50  ;;  %v839_v52 = vmul.f32 1.442695, %v970_v48  ;;  %720 = vst [vmem:[#allocation8 + $0xc8] sm:$0xff] %v661_v49  ;;  %v663_v53 = vadd.f32 %v662_v51, %v1398_v2 }
 0x230   :  { %v666_v54 = vpop.f32.mrf.mxu1 }
 0x231   :  { %1156 = vpow2.f32 %v839_v52  ;;  %v971_v55 = vclamps-f32 %v663_v53, 15.0  ;;  %v667_v56 = vadd.f32 %v666_v54, %v1396_v1 }
 0x232   :  { %v1151_v57 = vpop.eup %1150  ;;  %v668_v58 = vpop.f32.mrf.mxu1 }
 0x233   :  { %876 = vst [vmem:[#allocation9 + $0xa8] sm:$0xff] %v1151_v57  ;;  %v841_v59 = vmul.f32 1.442695, %v971_v55  ;;  %721 = vst [vmem:[#allocation8 + $0xd0] sm:$0xff] %v667_v56  ;;  %v669_v60 = vadd.f32 %v668_v58, %v1398_v2 }
 0x234   :  { %v670_v61 = vpop.f32.mrf.mxu1 }
 0x235   :  { %1158 = vpow2.f32 %v841_v59  ;;  %v972_v62 = vclamps-f32 %v669_v60, 15.0  ;;  %v671_v63 = vadd.f32 %v670_v61, %v1396_v1 }
 0x236   :  { %v1153_v0 = vpop.eup %1152  ;;  %v672_v11 = vpop.f32.mrf.mxu1 }
 0x237   :  { %877 = vst [vmem:[#allocation9 + $0xb0] sm:$0xff] %v1153_v0  ;;  %v843_v3 = vmul.f32 1.442695, %v972_v62  ;;  %722 = vst [vmem:[#allocation8 + $0xd8] sm:$0xff] %v671_v63  ;;  %v673_v8 = vadd.f32 %v672_v11, %v1398_v2 }
 0x238   :  { %v676_v4 = vpop.f32.mrf.mxu1 }
 0x239   :  { %1160 = vpow2.f32 %v843_v3  ;;  %v973_v5 = vclamps-f32 %v673_v8, 15.0  ;;  %v677_v6 = vadd.f32 %v676_v4, %v1396_v1 }
 0x23a   :  { %v1155_v7 = vpop.eup %1154  ;;  %v678_v9 = vpop.f32.mrf.mxu1 }
 0x23b   :  { %878 = vst [vmem:[#allocation9 + $0xb8] sm:$0xff] %v1155_v7  ;;  %v845_v10 = vmul.f32 1.442695, %v973_v5  ;;  %723 = vst [vmem:[#allocation8 + $0xe0] sm:$0xff] %v677_v6  ;;  %v679_v12 = vadd.f32 %v678_v9, %v1398_v2 }
 0x23c   :  { %v680_v13 = vpop.f32.mrf.mxu1 }
 0x23d   :  { %1162 = vpow2.f32 %v845_v10  ;;  %v974_v14 = vclamps-f32 %v679_v12, 15.0  ;;  %v681_v15 = vadd.f32 %v680_v13, %v1396_v1 }
 0x23e   :  { %v1157_v16 = vpop.eup %1156  ;;  %v682_v17 = vpop.f32.mrf.mxu1 }
 0x23f   :  { %879 = vst [vmem:[#allocation9 + $0xc0] sm:$0xff] %v1157_v16  ;;  %v847_v18 = vmul.f32 1.442695, %v974_v14  ;;  %724 = vst [vmem:[#allocation8 + $0xe8] sm:$0xff] %v681_v15  ;;  %v683_v19 = vadd.f32 %v682_v17, %v1398_v2 }
 0x240   :  { %v686_v20 = vpop.f32.mrf.mxu1 }
 0x241   :  { %1164 = vpow2.f32 %v847_v18  ;;  %v975_v21 = vclamps-f32 %v683_v19, 15.0  ;;  %v687_v22 = vadd.f32 %v686_v20, %v1396_v1 }
 0x242   :  { %v1159_v23 = vpop.eup %1158  ;;  %v688_v24 = vpop.f32.mrf.mxu1 }
 0x243   :  { %880 = vst [vmem:[#allocation9 + $0xc8] sm:$0xff] %v1159_v23  ;;  %v849_v25 = vmul.f32 1.442695, %v975_v21  ;;  %725 = vst [vmem:[#allocation8 + $0xf0] sm:$0xff] %v687_v22  ;;  %v689_v26 = vadd.f32 %v688_v24, %v1398_v2 }
 0x244   :  { %v690_v27 = vpop.f32.mrf.mxu1 }
 0x245   :  { %1166 = vpow2.f32 %v849_v25  ;;  %v976_v28 = vclamps-f32 %v689_v26, 15.0  ;;  %v691_v29 = vadd.f32 %v690_v27, %v1396_v1 }
 0x246   :  { %v1161_v30 = vpop.eup %1160  ;;  %v692_v31 = vpop.f32.mrf.mxu1 }
 0x247   :  { %881 = vst [vmem:[#allocation9 + $0xd0] sm:$0xff] %v1161_v30  ;;  %v851_v32 = vmul.f32 1.442695, %v976_v28  ;;  %726 = vst [vmem:[#allocation8 + $0xf8] sm:$0xff] %v691_v29  ;;  %v693_v33 = vadd.f32 %v692_v31, %v1398_v2 }
 0x248   :  { %1243 = shalt.err (!%p1240_p5)
}
 0x249   :  { %898 = dma.vmem_to_hbm [thread:$0]  %s893_s16, 4096, %s1481_s5, [#allocation4], %s1284_s7, %s1284_s7, %s1285_s8   ;;  %1168 = vpow2.f32 %v851_v32  ;;  %v977_v1 = vclamps-f32 %v693_v33, 15.0 }
 0x24a   :  { %v1163_v34 = vpop.eup %1162  ;;  %s1289_s20 = smov [#allocation9]  }
 0x24b   :  { %882 = vst [vmem:[#allocation9 + $0xd8] sm:$0xff] %v1163_v34  ;;  %v853_v35 = vmul.f32 1.442695, %v977_v1  ;;  %s904_s21 = sshll.u32 %s1289_s20, 4  ;;  %s905_s21 = int_to_ptr.vmem [resolvable:$true] %s904_s21 }
 0x24c   :  { %s1252_s22 = scalar_lea.vmem %s905_s21, 4096  ;;  %p1257_p7 = scmp.lt.s32.totalorder %s905_s21, %s905_s21 }
 0x24d   :  { %1170 = vpow2.f32 %v853_v35  ;;  %p1253_p6 = scmp.ne.s32.totalorder %s905_s21, %s1252_s22  ;;  %p1258_p8 = scmp.lt.s32.totalorder %s1252_s22, %s1252_s22 }
 0x24e   :  { %v1165_v2 = vpop.eup %1164 }
 0x24f   :  { %883 = vst [vmem:[#allocation9 + $0xe0] sm:$0xff] %v1165_v2  ;;  %p1259_p9 = por %p1258_p8, %p1257_p7 }
 0x251   :  { %p1260_p10 = pnand %p1259_p9, %p1253_p6 }
 0x252   :  { %v1167_v36 = vpop.eup %1166 }
 0x253   :  { %884 = vst [vmem:[#allocation9 + $0xe8] sm:$0xff] %v1167_v36 }
 0x256   :  { %v1169_v37 = vpop.eup %1168 }
 0x257   :  { %885 = vst [vmem:[#allocation9 + $0xf0] sm:$0xff] %v1169_v37 }
 0x25a   :  { %v1171_v38 = vpop.eup %1170 }
 0x25b   :  { %886 = vst [vmem:[#allocation9 + $0xf8] sm:$0xff] %v1171_v38 }
 0x25c   :  { %1263 = shalt.err (!%p1260_p10)
}
 0x25d   :  { %910 = dma.vmem_to_hbm [thread:$0]  %s905_s21, 4096, %s1482_s6, [#allocation10], %s1284_s7, %s1284_s7, %s1285_s8  }
 0x25e   :  { %1276 = dma.done.wait [#allocation4], 4096  }
 0x25f   :  { %1277 = vsyncadd [#allocation4], 4294963200 }
 0x260   :  { %1278 = dma.done.wait [#allocation10], 4096  }
 0x261   :  { %1279 = vsyncadd [#allocation10], 4294963200 }
 0x262   :  { %917 = vsyncpa [#allocation3], 1 }
 0x263   :  { %918 = vsyncpa [#allocation6], 1 }
 0x264   :  { %919 = vsyncpa [#allocation4], 1 }
 0x265   :  { %920 = vsyncpa [#allocation10], 1 }

</bundles_post_ra>
